<compile_context>
chip_gen: v7x
topology: tpu7x:2x2x1
jax: 0.10.0
libtpu: 0.0.40
codegen_flags: <defaults>
</compile_context>

<pallas_src>
import math

import jax
import jax.numpy as jnp
from jax.experimental import pallas as pl
from jax.experimental.pallas import tpu as pltpu


def _round_up(v, m):
    return ((v + m - 1) // m) * m


def _linear_kernel(x_ref, w_ref, b_ref, o_ref):
    # MXU matmul with f32 accumulation + VPU bias add; one full-lane store per tile.
    acc = jnp.dot(x_ref[...], w_ref[...], preferred_element_type=jnp.float32)
    o_ref[...] = (acc + b_ref[...]).astype(o_ref.dtype)


def _choose_packing(dim_in, emb_dim, itemsize, max_w_bytes=2 << 20):
    """Smallest p such that p*dim_in and p*emb_dim are both multiples of 128
    (lane-dense loads and stores), capped so kron(I_p, W) stays small."""
    def need(d):
        return 128 // math.gcd(128, d)

    p_in, p_out = need(dim_in), need(emb_dim)
    p = p_in * p_out // math.gcd(p_in, p_out)  # lcm
    if p * dim_in * p * emb_dim * itemsize <= max_w_bytes:
        return p
    # Fallback: only make the output (store stream) lane-dense.
    if p_out * dim_in * p_out * emb_dim * itemsize <= max_w_bytes:
        return p_out
    return 1


class LinearNodeEncoder:
    """Pallas-TPU equivalent of torch.nn.Linear(dim_in, emb_dim) on batch.x.

    weight: [dim_in, emb_dim] (i.e. torch weight.T), bias: [emb_dim].
    The packed block-diagonal weight kron(I_p, W) and the tiled bias are built
    once here; __call__ maps x: [N, dim_in] -> [N, emb_dim].
    """

    def __init__(self, weight, bias, *, compute_dtype=None, tile_rows=2048):
        dim_in, emb_dim = weight.shape
        self.dim_in, self.emb_dim = dim_in, emb_dim
        self.tile_rows = int(tile_rows)

        wdtype = compute_dtype if compute_dtype is not None else weight.dtype
        self.p = _choose_packing(dim_in, emb_dim, jnp.dtype(wdtype).itemsize)
        self.k_packed = self.p * dim_in
        self.m_packed = self.p * emb_dim

        # Block-diagonal packed weight: one packed row holds p consecutive node
        # rows, each multiplied by its own copy of W.  Built once.
        self.wp = jnp.kron(jnp.eye(self.p, dtype=jnp.float32),
                           weight.astype(jnp.float32)).astype(wdtype)
        self.bp = jnp.tile(bias.astype(jnp.float32), self.p).reshape(1, self.m_packed)

        # f32 copies for the tiny XLA remainder / fallback path.
        self.weight_f32 = weight.astype(jnp.float32)
        self.bias_f32 = bias.astype(jnp.float32)

    def __call__(self, x, *, out_dtype=None):
        N, dim_in = x.shape
        assert dim_in == self.dim_in, "x must be [N, dim_in]"
        out_dtype = x.dtype if out_dtype is None else out_dtype
        p = self.p
        k_packed, m_packed = self.k_packed, self.m_packed

        n_main = (N // p) * p
        parts = []

        if n_main > 0:
            # Free, contiguous packing reshape (row-major layout unchanged).
            xp = x[:n_main].reshape(n_main // p, k_packed)
            # Only the tiny packed weight is cast if dtypes differ (never x).
            wp = self.wp if self.wp.dtype == x.dtype else self.wp.astype(x.dtype)

            rows = xp.shape[0]
            xb = jnp.dtype(x.dtype).itemsize
            ob = jnp.dtype(out_dtype).itemsize
            wb = jnp.dtype(wp.dtype).itemsize

            # Sublane multiple: 8 for f32, 16 for bf16, 32 for 8-bit dtypes.
            sub = max(8, 32 // min(xb, ob))

            tile = min(_round_up(self.tile_rows, sub), _round_up(rows, sub))
            # Keep the double-buffered in+out working set bounded (v7x: 64 MiB
            # physical VMEM vs 128 MiB on v5e/v6e).
            while tile > sub and 2 * tile * (k_packed * xb + m_packed * ob) > 24 * 1024 * 1024:
                tile = _round_up(tile // 2, sub)
            # Ensure >= 2 grid steps so the "parallel" row axis can shard
            # across both TensorCores on v7x (no-op on 1-TC v5e/v6e).
            if rows > 2 * sub and pl.cdiv(rows, tile) < 2:
                tile = _round_up(pl.cdiv(rows, 2), sub)
            grid = (pl.cdiv(rows, tile),)

            # Only set an explicit VMEM budget if the tile outgrows the scoped
            # default (16 MiB on v5e, 32 MiB on v6e/v7x).
            vmem_needed = (2 * tile * (k_packed * xb + m_packed * ob)
                           + k_packed * m_packed * wb + m_packed * 4)
            vmem_limit = None
            if vmem_needed > 12 * 1024 * 1024:
                vmem_limit = min(_round_up(vmem_needed + (4 << 20), 1 << 20), 48 << 20)

            cost = pl.CostEstimate(
                flops=2 * rows * k_packed * m_packed,
                transcendentals=0,
                bytes_accessed=(rows * k_packed * xb + k_packed * m_packed * wb
                                + rows * m_packed * ob + m_packed * 4),
            )

            out = pl.pallas_call(
                _linear_kernel,
                out_shape=jax.ShapeDtypeStruct((rows, m_packed), out_dtype),
                grid=grid,
                in_specs=[
                    pl.BlockSpec((tile, k_packed), lambda i: (i, 0)),
                    pl.BlockSpec((k_packed, m_packed), lambda i: (0, 0)),  # VMEM-resident
                    pl.BlockSpec((1, m_packed), lambda i: (0, 0)),         # VMEM-resident
                ],
                out_specs=pl.BlockSpec((tile, m_packed), lambda i: (i, 0)),
                compiler_params=pltpu.CompilerParams(
                    dimension_semantics=("parallel",),
                    vmem_limit_bytes=vmem_limit),
                cost_estimate=cost,
            )(xp, wp, self.bp)

            parts.append(out.reshape(n_main, self.emb_dim))  # free un-packing reshape

        rem = N - n_main
        if rem > 0:
            # <= p-1 leftover rows: tiny XLA matmul instead of padding all of x.
            xr = x[n_main:]
            yr = (jnp.dot(xr, self.weight_f32, preferred_element_type=jnp.float32)
                  + self.bias_f32).astype(out_dtype)
            parts.append(yr)

        return parts[0] if len(parts) == 1 else jnp.concatenate(parts, axis=0)


if __name__ == "__main__":
    # Config implied by the module: cfg.share.dim_in -> emb_dim linear map on batch.x.
    dim_in = 16      # cfg.share.dim_in
    emb_dim = 32     # emb_dim
    num_nodes = 256  # batch.x rows (graph nodes)

    key = jax.random.PRNGKey(0)
    kx, kw, kb = jax.random.split(key, 3)

    # Node features (batch.x)
    x = jax.random.normal(kx, (num_nodes, dim_in), dtype=jnp.float32)

    # Deterministic parameter init mimicking torch.nn.Linear: U(-1/sqrt(fan_in), ...)
    bound = 1.0 / math.sqrt(dim_in)
    w_torch = jax.random.uniform(kw, (emb_dim, dim_in), minval=-bound, maxval=bound,
                                 dtype=jnp.float32)   # torch layout [out, in]
    bias = jax.random.uniform(kb, (emb_dim,), minval=-bound, maxval=bound,
                              dtype=jnp.float32)
    weight = w_torch.T  # kernel layout [in, out]

    ref = x @ weight + bias[None, :]

    enc = LinearNodeEncoder(weight, bias)

    # f32 path.
    out = jax.block_until_ready(enc(x))
    assert out.shape == (num_nodes, emb_dim)
    assert jnp.allclose(out, ref, atol=1e-5, rtol=1e-5)

    # Ragged node count: kernel on floor(N/p)*p rows + tiny XLA tail (no full-x pad).
    n_odd = 133
    out_odd = jax.block_until_ready(enc(x[:n_odd]))
    assert out_odd.shape == (n_odd, emb_dim)
    assert jnp.allclose(out_odd, ref[:n_odd], atol=1e-5, rtol=1e-5)

    # Tiny N (< packing factor): pure XLA fallback path.
    out_tiny = jax.block_until_ready(enc(x[:3]))
    assert out_tiny.shape == (3, emb_dim)
    assert jnp.allclose(out_tiny, ref[:3], atol=1e-5, rtol=1e-5)

    # bf16 in / bf16 out: x arrives already in bf16 from the producer (no
    # wrapper-side cast pass over x); store stream also halved.  In-kernel
    # accumulation and bias add stay f32 (inputs themselves are rounded, hence
    # the loose tolerance at this small dim_in).
    enc_bf16 = LinearNodeEncoder(weight, bias, compute_dtype=jnp.bfloat16)
    x_bf16 = x.astype(jnp.bfloat16)
    out_bf16 = jax.block_until_ready(enc_bf16(x_bf16, out_dtype=jnp.bfloat16))
    assert out_bf16.shape == (num_nodes, emb_dim)
    assert jnp.allclose(out_bf16.astype(jnp.float32), ref, atol=5e-2, rtol=5e-2)

    print("KERNEL_OK")
</pallas_src>

<mosaic_0001>
module attributes {stable_mosaic.version = 11 : i64} {
  func.func @_linear_kernel(%arg0: i32, %arg1: memref<16x128xf32, #tpu.memory_space<vmem>>, %arg2: memref<128x256xf32, #tpu.memory_space<vmem>>, %arg3: memref<1x256xf32, #tpu.memory_space<vmem>>, %arg4: memref<16x256xf32, #tpu.memory_space<vmem>>) attributes {dimension_semantics = [#tpu.dimension_semantics<parallel>], iteration_bounds = array<i64: 2>, scalar_prefetch = 0 : i64, scratch_operands = 0 : i64, tpu.core_type = #tpu.core_type<tc>, window_params = [{transform_indices = @transform_0, window_bounds = array<i64: 16, 128>}, {pipeline_mode = #tpu.pipeline_mode<synchronous>, transform_indices = @transform_1, window_bounds = array<i64: 128, 256>}, {pipeline_mode = #tpu.pipeline_mode<synchronous>, transform_indices = @transform_2, window_bounds = array<i64: 1, 256>}, {transform_indices = @transform_3, window_bounds = array<i64: 16, 256>}]} {
    %c0 = arith.constant 0 : index
    %c0_0 = arith.constant 0 : index
    %0 = vector.load %arg1[%c0, %c0_0] : memref<16x128xf32, #tpu.memory_space<vmem>>, vector<16x128xf32>
    %c0_1 = arith.constant 0 : index
    %c0_2 = arith.constant 0 : index
    %1 = vector.load %arg2[%c0_1, %c0_2] : memref<128x256xf32, #tpu.memory_space<vmem>>, vector<128x256xf32>
    %cst = arith.constant dense<0.000000e+00> : vector<16x256xf32>
    %2 = tpu.matmul %0, %1, %cst {dimension_numbers = #tpu.dot_dimension_numbers<[1], [0], [0], [1], [0, 0, 1, 1], [], []>} : vector<16x128xf32>, vector<128x256xf32>, vector<16x256xf32> -> vector<16x256xf32>
    %c0_3 = arith.constant 0 : index
    %c0_4 = arith.constant 0 : index
    %3 = vector.load %arg3[%c0_3, %c0_4] : memref<1x256xf32, #tpu.memory_space<vmem>>, vector<1x256xf32>
    %4 = vector.broadcast %3 : vector<1x256xf32> to vector<16x256xf32>
    %5 = arith.addf %2, %4 : vector<16x256xf32>
    %c0_5 = arith.constant 0 : index
    %c0_6 = arith.constant 0 : index
    %6 = vector.load %arg4[%c0_5, %c0_6] : memref<16x256xf32, #tpu.memory_space<vmem>>, vector<16x256xf32>
    tpu.vector_store %arg4[%c0_5, %c0_6], %5 {strides = array<i32>} : memref<16x256xf32, #tpu.memory_space<vmem>>, vector<16x256xf32>,
    return
  }
  func.func @transform_0(%arg0: i32) -> (i32, i32) {
    %c0_i32 = arith.constant 0 : i32
    %c0_i32_0 = arith.constant 0 : i32
    return %arg0, %c0_i32 : i32, i32
  }
  func.func @transform_1(%arg0: i32) -> (i32, i32) {
    %c0_i32 = arith.constant 0 : i32
    %c0_i32_0 = arith.constant 0 : i32
    %c0_i32_1 = arith.constant 0 : i32
    return %c0_i32, %c0_i32_0 : i32, i32
  }
  func.func @transform_2(%arg0: i32) -> (i32, i32) {
    %c0_i32 = arith.constant 0 : i32
    %c0_i32_0 = arith.constant 0 : i32
    %c0_i32_1 = arith.constant 0 : i32
    return %c0_i32, %c0_i32_0 : i32, i32
  }
  func.func @transform_3(%arg0: i32) -> (i32, i32) {
    %c0_i32 = arith.constant 0 : i32
    %c0_i32_0 = arith.constant 0 : i32
    return %arg0, %c0_i32 : i32, i32
  }
}

</mosaic_0001>

<bundles_post_ra>
// kernel: tpu_custom_call.1
= control target key start
LH: loop header
LB: loop body
LE: loop exit
PB: predicated region body
PF: predicated region fallthrough
CT: control target
= control target key end

     0   :  { %8 = vsyncpa [#allocation3], 0  ;;  %s932_s0 = inlined_call_operand.hbm [shape: f32[32,128], index: 0, kind: input, shape index: {}]   ;;  %s933_s1 = inlined_call_operand.hbm [shape: f32[128,256], index: 1, kind: input, shape index: {}]   ;;  %s934_s2 = inlined_call_operand.vmem [shape: f32[1,256], index: 2, kind: input, shape index: {}]   ;;  %s935_s3 = inlined_call_operand.hbm [shape: f32[32,256], index: 3, kind: output, shape index: {}]  }
   0x1   :  { %10 = vsyncpa [#allocation3 + $0x1], 0 }
   0x2   :  { %11 = vsyncpa [#allocation6], 0 }
   0x3   :  { %12 = vsyncpa [#allocation4], 0 }
   0x4   :  { %14 = vsyncpa [#allocation4 + $0x1], 0  ;;  %s723_s12 = smov 0   ;;  %s725_s13 = smov 0  }
   0x5   :  { %s727_s14 = smov 0   ;;  %s729_s15 = smov 0  }
   0x6 LB: > { %s744_s16 = sadd.s32 4294967295, %s691_s15   ;;  %s431_s17 = sadd.s32 4294967294, %s691_s15   ;;  %s691_s15 = sphi %s729_s15, %s955_s15   ;;  %s687_s14 = sphi %s727_s14, %s954_s14   ;;  %s683_s13 = sphi %s725_s13, %s953_s13   ;;  %s679_s12 = sphi %s723_s12, %s952_s12  }
   0x7   : > { %p40_p0 = scmp.ne.s32.totalorder %s683_s13, %s679_s12  ;;  %p936_p1 = scmp.eq.s32.totalorder %s744_s16, 0 }
   0x8   : > { %p112_p3 = scmp.eq.s32.totalorder %s431_s17, 1  ;;  %p432_p5 = scmp.ge.s32.totalorder %s691_s15, 1 }
   0x9   : > { %p753_p4 = por %p936_p1, %p40_p0  ;;  %p119_p7 = scmp.lt.s32.totalorder %s691_s15, 3 }
   0xa   : > { %p758_p6 = por %p112_p3, %p40_p0  ;;  %s693_s21 = smov [#allocation5]  }
   0xb   : > { %s939_s18 = scalar_select %p753_p4, 1, 0 }
   0xc   : > { %s940_s19 = scalar_select %p758_p6, 1, 0 }
   0xd   : > { %p763_p8 = pnand %p432_p5, %p119_p7  ;;  %s131_s22 = sshll.u32 %s693_s21, 4  ;;  %s767_s22 = int_to_ptr.vmem [resolvable:$true] %s131_s22 }
   0xe   : > { %s779_s24 = sadd.s32 1, %s691_s15   ;;  %s27_s25 = sadd.s32 1, %s687_s14 }
   0xf   : > { %s941_s20 = scalar_select %p763_p8, 1, 0 }
  0x10   : > { %p507_p9 = pneg %p763_p8  ;;  %s24_s26 = ssub.s32 %s691_s15, %s779_s24 }
  0x11   : > { %s563_s29 = scalar_lea.hbm %s933_s1, 4096 }
  0x12   : > { %p774_p11 = pnand %p507_p9, %p936_p1  ;;  %p564_p12 = scmp.ne.s32.totalorder %s933_s1, %s563_s29 }
  0x13   : > { %p570_p5 = scmp.lt.u32.totalorder %s563_s29, %s933_s1 }
  0x14   : > { %p565_p13 = pneg %p774_p11 }
  0x16   : > { %p566_p0 = pnand %p565_p13, %p564_p12 }
  0x18   : > { %p567_p3 = pneg %p566_p0 }
  0x1a   : > { %p572_p7 = pnand %p570_p5, %p567_p3 }
  0x1c   : > { %575 = shalt.err (!%p572_p7)
}
  0x1d   : > { %s576_s7 = scalar_lea.vmem %s767_s22, 4096  ;;  %p584_p2 = scmp.lt.s32.totalorder %s767_s22, %s767_s22 }
  0x1e   : > { %p577_p9 = scmp.ne.s32.totalorder %s767_s22, %s576_s7  ;;  %p585_p6 = scmp.lt.s32.totalorder %s576_s7, %s576_s7 }
  0x20   : > { %p579_p10 = pnand %p577_p9, %p565_p13  ;;  %p586_p4 = por %p585_p6, %p584_p2 }
  0x22   : > { %p580_p1 = pneg %p579_p10 }
  0x24   : > { %p587_p8 = pnand %p586_p4, %p580_p1 }
  0x26   : > { %590 = shalt.err (!%p587_p8)
}
  0x27   : > { %s694_s8 = smov 256   ;;  %s695_s9 = smov 16  }
  0x28   : > { %510 = dma.hbm_to_vmem [thread:$0]  (!%p774_p11), %s933_s1, 4096, %s767_s22, [#allocation6], %s694_s8, %s694_s8, %s695_s9  }
  0x29   : > { %p25_p2 = scmp.eq.s32.totalorder %s24_s26, 0  ;;  %p34_p1 = scmp.ne.s32.totalorder %s687_s14, %s683_s13 }
  0x2a   : > { %p35_p4 = scmp.eq.s32.totalorder %s691_s15, 0  ;;  %p520_p6 = scmp.lt.s32.totalorder %s691_s15, 2 }
  0x2b   : > { %s810_s17 = scalar_select %p25_p2, %s687_s14, %s27_s25  }
  0x2c   : > { %p36_p8 = por %p35_p4, %p34_p1  ;;  %p943_p10 = scmp.eq.s32.totalorder %s744_s16, 1 }
  0x2d   : > { %s148_s27 = sand.u32 1, %s687_s14   ;;  %s448_s28 = sshll.u32 %s691_s15, 8 }
  0x2e   : > { %p814_p12 = por %p943_p10, %p34_p1  ;;  %s435_s29 = sshll.u32 %s148_s27, 4 }
  0x2f   : > { %s823_s4 = scalar_lea.hbm %s932_s0, %s448_s28  ;;  %s152_s22 = scalar_lea.vmem [#allocation2], %s435_s29 }
  0x30   : > { %s159_s25 = sshll.u32 %s152_s22, 4  ;;  %p825_p11 = pnand %p520_p6, %p36_p8  ;;  %s829_s25 = int_to_ptr.vmem [resolvable:$true] %s159_s25 }
  0x31   : > { %s831_s5 = scalar_lea.sflag [#allocation3], %s148_s27  ;;  %s591_s6 = scalar_lea.hbm %s823_s4, 256 }
  0x32   : > { %p592_p13 = scmp.ne.s32.totalorder %s823_s4, %s591_s6  ;;  %p593_p0 = pneg %p825_p11 }
  0x33   : > { %s596_s9 = scalar_lea.hbm %s932_s0, 512  ;;  %p597_p7 = scmp.lt.u32.totalorder %s823_s4, %s932_s0 }
  0x34   : > { %p594_p3 = pnand %p593_p0, %p592_p13  ;;  %p598_p9 = scmp.lt.u32.totalorder %s596_s9, %s591_s6 }
  0x35   : > { %p600_p1 = scmp.lt.u32.totalorder %s591_s6, %s823_s4 }
  0x36   : > { %p595_p5 = pneg %p594_p3  ;;  %p599_p2 = por %p598_p9, %p597_p7 }
  0x38   : > { %p601_p4 = por %p600_p1, %p599_p2 }
  0x3a   : > { %p602_p6 = pnand %p601_p4, %p595_p5 }
  0x3c   : > { %605 = shalt.err (!%p602_p6)
}
  0x3d   : > { %s606_s27 = scalar_lea.vmem %s829_s25, 256  ;;  %s696_s28 = smov [#allocation2]  }
  0x3e   : > { %p607_p8 = scmp.ne.s32.totalorder %s829_s25, %s606_s27  ;;  %s611_s29 = sshll.u32 %s696_s28, 4  ;;  %s612_s29 = int_to_ptr.vmem [resolvable:$false] %s611_s29 }
  0x3f   : > { %s613_s23 = scalar_lea.vmem %s612_s29, 512  ;;  %p614_p3 = scmp.lt.s32.totalorder %s829_s25, %s612_s29 }
  0x40   : > { %p609_p10 = pnand %p607_p8, %p593_p0  ;;  %p615_p7 = scmp.lt.s32.totalorder %s613_s23, %s606_s27 }
  0x42   : > { %p610_p13 = pneg %p609_p10  ;;  %p616_p9 = por %p615_p7, %p614_p3 }
  0x44   : > { %p617_p2 = pnand %p616_p9, %p610_p13 }
  0x46   : > { %620 = shalt.err (!%p617_p2)
}
  0x47   : > { %s697_s30 = smov 128   ;;  %s698_s22 = smov 8  }
  0x48   : > { %514 = dma.hbm_to_vmem [thread:$0]  (!%p825_p11), %s823_s4, 256, %s829_s25, %s831_s5, %s697_s30, %s697_s30, %s698_s22  }
  0x49   : > { %p946_p0 = scmp.ne.s32.totalorder %s941_s20, 0 }
  0x4a   : > { %s862_s6 = sand.u32 (!%p946_p0), 1, %s683_s13   ;;  %p947_p5 = scmp.ne.s32.totalorder (!%p946_p0), %s939_s18, 0 }
  0x4b   : > { %171 = sbr.rel (%p946_p0) target bundleno = 351 (0x15f), region = 32  ;;  %s439_s7 = sshll.u32 (!%p946_p0), %s862_s6, 4 }
  0x4c   : > { %s174_s8 = scalar_lea.sflag (!%p946_p0), [#allocation3], %s862_s6  ;;  %s866_s9 = scalar_lea.vmem (!%p946_p0), [#allocation2], %s439_s7 }
  0x52   : > { %666 = dma.done.wait (%p947_p5), %s174_s8, 256  }
  0x53   : > { %668 = vsyncadd (%p947_p5), %s174_s8, 4294967040  ;;  %p948_p11 = scmp.eq.s32.totalorder %s744_s16, 0 }
  0x55   : > { %670 = dma.done.wait (%p948_p11), [#allocation6], 4096   ;;  %p949_p1 = pmov %p948_p11 }
  0x56   : > { %v699_v0 = vmov 0.0   ;;  %v209_v1 = vld [vmem:[#allocation5 + $0x8] sm:$0xff]  ;;  %v211_v2 = vld [vmem:[#allocation5 + $0x18] sm:$0xff]  ;;  %v208_v3 = vld [vmem:[#allocation5] sm:$0xff]  ;;  %v242_v51 = vlaneseq  ;;  %s441_s18 = sshll.u32 %s862_s6, 5  ;;  %s450_s5 = sshll.u32 %s744_s16, 9 }
  0x57   : > { %672 = vsyncadd (%p949_p1), [#allocation6], 4294963200  ;;  %316 = vmatprep.mubr.f32.mxu0 %v699_v0  ;;  %322 = vmatprep.mubr.f32.mxu1 %v699_v0  ;;  %v451_v4 = vpack.c.bf16 %v211_v2, %v209_v1  ;;  %v210_v5 = vld [vmem:[#allocation5 + $0x10] sm:$0xff]  ;;  %v213_v6 = vld [vmem:[#allocation5 + $0x28] sm:$0xff]  ;;  %s203_s25 = scalar_lea.vmem [#allocation7], %s441_s18  ;;  %s888_s27 = scalar_lea.hbm %s935_s3, %s450_s5 }
  0x58   : > { %v215_v7 = vld [vmem:[#allocation5 + $0x38] sm:$0xff]  ;;  %v453_v8 = vpack.c.bf16 %v210_v5, %v208_v3  ;;  %v212_v10 = vld [vmem:[#allocation5 + $0x20] sm:$0xff]  ;;  %v214_v11 = vld [vmem:[#allocation5 + $0x30] sm:$0xff]  ;;  %v243_v52 = vshrl.u32 %v242_v51, 7  ;;  %s348_s26 = sshll.u32 %s203_s25, 4  ;;  %s334_s16 = scalar_lea.sflag [#allocation4], %s862_s6  ;;  %s883_s26 = int_to_ptr.vmem [resolvable:$true] %s348_s26 }
  0x59   : > { %v455_v9 = vpack.c.bf16 %v215_v7, %v213_v6  ;;  %v217_v12 = vld [vmem:[#allocation5 + $0x48] sm:$0xff]  ;;  %452 = vmatprep.subr.bf16.mxu0 %v451_v4  ;;  %483 = vmatprep.subr.bf16.mxu1 %v451_v4  ;;  %v219_v13 = vld [vmem:[#allocation5 + $0x58] sm:$0xff]  ;;  %v457_v14 = vpack.c.bf16 %v214_v11, %v212_v10  ;;  %v216_v16 = vld [vmem:[#allocation5 + $0x40] sm:$0xff]  ;;  %s621_s28 = scalar_lea.vmem %s883_s26, 512  ;;  %s700_s29 = smov [#allocation7]  }
  0x5a   : > { %454 = vmatpush1.bf16.msra.mxu0 %v453_v8  ;;  %491 = vmatpush1.bf16.msra.mxu1 %v453_v8  ;;  %v459_v15 = vpack.c.bf16 %v219_v13, %v217_v12  ;;  %v218_v17 = vld [vmem:[#allocation5 + $0x50] sm:$0xff]  ;;  %v221_v18 = vld [vmem:[#allocation5 + $0x68] sm:$0xff]  ;;  %v223_v19 = vld [vmem:[#allocation5 + $0x78] sm:$0xff]  ;;  %v244_v53 = vsub.s32 0, %v243_v52  ;;  %v248_v55 = vsub.s32 1, %v243_v52  ;;  %p622_p4 = scmp.ne.s32.totalorder %s883_s26, %s621_s28  ;;  %s625_s23 = sshll.u32 %s700_s29, 4  ;;  %s626_s23 = int_to_ptr.vmem [resolvable:$false] %s625_s23 }
  0x5b   : > { %456 = vmatprep.subr.bf16.mxu0 %v455_v9  ;;  %484 = vmatprep.subr.bf16.mxu1 %v455_v9  ;;  %v461_v20 = vpack.c.bf16 %v218_v17, %v216_v16  ;;  %v463_v21 = vpack.c.bf16 %v223_v19, %v221_v18  ;;  %v220_v22 = vld [vmem:[#allocation5 + $0x60] sm:$0xff]  ;;  %v222_v23 = vld [vmem:[#allocation5 + $0x70] sm:$0xff]  ;;  %v225_v24 = vld [vmem:[#allocation5 + $0x88] sm:$0xff]  ;;  %s627_s30 = scalar_lea.vmem %s626_s23, 1024  ;;  %p628_p10 = scmp.lt.s32.totalorder %s883_s26, %s626_s23 }
  0x5c   : > { %v227_v25 = vld [vmem:[#allocation5 + $0x98] sm:$0xff]  ;;  %v465_v26 = vpack.c.bf16 %v222_v23, %v220_v22  ;;  %v224_v28 = vld [vmem:[#allocation5 + $0x80] sm:$0xff]  ;;  %v226_v29 = vld [vmem:[#allocation5 + $0x90] sm:$0xff]  ;;  %p623_p6 = pnand %p622_p4, %p814_p12  ;;  %p629_p13 = scmp.lt.s32.totalorder %s627_s30, %s621_s28 }
  0x5d   : > { %v467_v27 = vpack.c.bf16 %v227_v25, %v225_v24  ;;  %v229_v30 = vld [vmem:[#allocation5 + $0xa8] sm:$0xff]  ;;  %v231_v31 = vld [vmem:[#allocation5 + $0xb8] sm:$0xff]  ;;  %v469_v32 = vpack.c.bf16 %v226_v29, %v224_v28  ;;  %v228_v34 = vld [vmem:[#allocation5 + $0xa0] sm:$0xff] }
  0x5e   : > { %458 = vmatpush1.bf16.msra.mxu0 %v457_v14  ;;  %492 = vmatpush1.bf16.msra.mxu1 %v457_v14  ;;  %v471_v33 = vpack.c.bf16 %v231_v31, %v229_v30  ;;  %v230_v35 = vld [vmem:[#allocation5 + $0xb0] sm:$0xff]  ;;  %v233_v36 = vld [vmem:[#allocation5 + $0xc8] sm:$0xff]  ;;  %v235_v37 = vld [vmem:[#allocation5 + $0xd8] sm:$0xff]  ;;  %p624_p8 = pneg %p623_p6  ;;  %p630_p3 = por %p629_p13, %p628_p10 }
  0x5f   : > { %460 = vmatprep.subr.bf16.mxu0 %v459_v15  ;;  %485 = vmatprep.subr.bf16.mxu1 %v459_v15  ;;  %v473_v38 = vpack.c.bf16 %v230_v35, %v228_v34  ;;  %v475_v39 = vpack.c.bf16 %v235_v37, %v233_v36  ;;  %v232_v40 = vld [vmem:[#allocation5 + $0xc0] sm:$0xff]  ;;  %v234_v41 = vld [vmem:[#allocation5 + $0xd0] sm:$0xff]  ;;  %v237_v42 = vld [vmem:[#allocation5 + $0xe8] sm:$0xff] }
  0x60   : > { %v239_v43 = vld [vmem:[#allocation5 + $0xf8] sm:$0xff]  ;;  %v477_v44 = vpack.c.bf16 %v234_v41, %v232_v40  ;;  %v236_v46 = vld [vmem:[#allocation5 + $0xe0] sm:$0xff]  ;;  %v238_v47 = vld [vmem:[#allocation5 + $0xf0] sm:$0xff]  ;;  %p631_p7 = pnand %p630_p3, %p624_p8 }
  0x61   : > { %v479_v45 = vpack.c.bf16 %v239_v43, %v237_v42  ;;  %v481_v48 = vpack.c.bf16 %v238_v47, %v236_v46  ;;  %v206_v49 = vld [vmem:[%s866_s9] sm:$0xff]  ;;  %v207_v50 = vld [vmem:[%s866_s9 + $0x8] sm:$0xff] }
  0x62   : > { %462 = vmatpush1.bf16.msra.mxu0 %v461_v20  ;;  %493 = vmatpush1.bf16.msra.mxu1 %v461_v20  ;;  %v240_v54 = vld [vmem:[%s934_s2] sm:$0x3] }
  0x63   : > { %464 = vmatprep.subr.bf16.mxu0 %v463_v21  ;;  %486 = vmatprep.subr.bf16.mxu1 %v463_v21  ;;  %v245_v56 = vrot.slane %v240_v54, %v244_v53  ;;  %v249_v57 = vrot.slane %v240_v54, %v248_v55 }
  0x66   : > { %466 = vmatpush1.bf16.msra.mxu0 %v465_v26  ;;  %494 = vmatpush1.bf16.msra.mxu1 %v465_v26 }
  0x67   : > { %468 = vmatprep.subr.bf16.mxu0 %v467_v27  ;;  %487 = vmatprep.subr.bf16.mxu1 %v467_v27 }
  0x6a   : > { %470 = vmatpush1.bf16.msra.mxu0 %v469_v32  ;;  %495 = vmatpush1.bf16.msra.mxu1 %v469_v32 }
  0x6b   : > { %472 = vmatprep.subr.bf16.mxu0 %v471_v33  ;;  %488 = vmatprep.subr.bf16.mxu1 %v471_v33 }
  0x6e   : > { %474 = vmatpush1.bf16.msra.mxu0 %v473_v38  ;;  %496 = vmatpush1.bf16.msra.mxu1 %v473_v38 }
  0x6f   : > { %476 = vmatprep.subr.bf16.mxu0 %v475_v39  ;;  %489 = vmatprep.subr.bf16.mxu1 %v475_v39 }
  0x72   : > { %478 = vmatpush1.bf16.msra.mxu0 %v477_v44  ;;  %497 = vmatpush1.bf16.msra.mxu1 %v477_v44 }
  0x73   : > { %480 = vmatprep.subr.bf16.mxu0 %v479_v45  ;;  %490 = vmatprep.subr.bf16.mxu1 %v479_v45 }
  0x76   : > { %482 = vmatpush1.bf16.msra.mxu0 %v481_v48  ;;  %498 = vmatpush1.bf16.msra.mxu1 %v481_v48 }
  0x79   : > { %317 = vmatmul.mubr.f32.vlgmr.msra.gmra.mrb[0].mxu0 %v206_v49  ;;  %323 = vmatmul.mubr.f32.vlgmr.msra.gmra.mrb[0].mxu1 %v207_v50 }
 0x14c   : > { %v318_v58 = vpop.f32.mrb[0].mxu0  ;;  %v324_v59 = vpop.f32.mrb[0].mxu1 }
 0x14d   : > { %v319_v60 = vadd.f32 %v318_v58, %v245_v56  ;;  %v325_v61 = vadd.f32 %v324_v59, %v245_v56  ;;  %v320_v62 = vpop.f32.mrb[1].mxu0  ;;  %v326_v63 = vpop.f32.mrb[1].mxu1 }
 0x14e   : > { %v321_v0 = vadd.f32 %v320_v62, %v249_v57  ;;  %v327_v1 = vadd.f32 %v326_v63, %v249_v57 }
 0x14f   : > { %329 = vst [vmem:[%s203_s25] sm:$0xff] %v319_v60  ;;  %331 = vst [vmem:[%s203_s25 + $0x10] sm:$0xff] %v325_v61 }
 0x150   : > { %330 = vst [vmem:[%s203_s25 + $0x8] sm:$0xff] %v321_v0  ;;  %332 = vst [vmem:[%s203_s25 + $0x18] sm:$0xff] %v327_v1 }
 0x151   : > { %634 = shalt.err (!%p631_p7)
}
 0x152   : > { %s635_s22 = scalar_lea.hbm %s888_s27, 512  ;;  %s639_s9 = scalar_lea.hbm %s935_s3, 1024 }
 0x153   : > { %p636_p9 = scmp.ne.s32.totalorder %s888_s27, %s635_s22  ;;  %p640_p5 = scmp.lt.u32.totalorder %s888_s27, %s935_s3 }
 0x154   : > { %p641_p11 = scmp.lt.u32.totalorder %s639_s9, %s635_s22  ;;  %p643_p4 = scmp.lt.u32.totalorder %s635_s22, %s888_s27 }
 0x155   : > { %p637_p2 = pnand %p636_p9, %p814_p12 }
 0x156   : > { %p642_p1 = por %p641_p11, %p640_p5 }
 0x157   : > { %p638_p0 = pneg %p637_p2 }
 0x158   : > { %p644_p6 = por %p643_p4, %p642_p1 }
 0x15a   : > { %p645_p8 = pnand %p644_p6, %p638_p0 }
 0x15c   : > { %648 = shalt.err (!%p645_p8)
}
 0x15d   : > { %s701_s4 = smov 256   ;;  %s702_s25 = smov 16  }
 0x15e   : > { %505 = dma.vmem_to_hbm [thread:$0]  (%p814_p12), %s883_s26, 512, %s888_s27, %s334_s16, %s701_s4, %s701_s4, %s702_s25  }
 0x15f PF: > { %s363_s5 = sand.u32 1, %s679_s12   ;;  %p950_p10 = scmp.ne.s32.totalorder %s940_s19, 0 }
 0x160   : > { %p951_p13 = scmp.ge.s32.totalorder %s691_s15, 2  ;;  %s364_s10 = scalar_lea.sflag [#allocation4], %s363_s5 }
 0x162   : > { %p516_p3 = pnand %p951_p13, %p950_p10 }
 0x164   : > { %674 = dma.done.wait (!%p516_p3), %s364_s10, 512  }
 0x165   : > { %676 = vsyncadd (!%p516_p3), %s364_s10, 4294966784  ;;  %p17_p7 = scmp.ge.s32.totalorder %s779_s24, 4   ;;  %s952_s12 = smov %s683_s13 }
 0x166   : > { %s953_s13 = smov %s687_s14  ;;  %s954_s14 = smov %s810_s17 }
 0x167   : > { %s955_s15 = smov %s779_s24  ;;  %19 = sbr.rel (!%p17_p7) target bundleno = 6 (0x6), region = 81 }
 0x16e   :  { %369 = vsyncpa [#allocation3], 1 }
 0x16f   :  { %371 = vsyncpa [#allocation3 + $0x1], 1 }
 0x170   :  { %372 = vsyncpa [#allocation6], 1 }
 0x171   :  { %373 = vsyncpa [#allocation4], 1 }
 0x172   :  { %375 = vsyncpa [#allocation4 + $0x1], 1 }

</bundles_post_ra>
